<compile_context>
chip_gen: v7x
topology: tpu7x:2x2x1
jax: 0.10.0
libtpu: 0.0.40
codegen_flags: <defaults>
</compile_context>

<pallas_src>
import math

import jax
import jax.numpy as jnp
from jax.experimental import pallas as pl
from jax.experimental.pallas import tpu as pltpu

_LANE = 128  # vreg lane width (last dim)


def _min_sublane(dtype) -> int:
    """Native sublane multiple for the dtype (packed dtypes tile in pairs/quads)."""
    itemsize = jnp.dtype(dtype).itemsize
    if itemsize >= 4:
        return 8
    if itemsize == 2:
        return 16
    return 32


def _copy_kernel(x_ref, o_ref):
    # Pure identity copy of the current tile: the load/store slots saturate
    # first, any elementwise work would only add pressure.
    o_ref[...] = x_ref[...]


def _dma_copy_kernel(x_hbm, o_hbm, sem):
    # HBM -> HBM DMA: skips the HBM->VMEM->vreg->VMEM->HBM round trip entirely.
    # TODO(synk): chunk into 2-4 in-flight copies for very large arrays.
    cp = pltpu.make_async_copy(x_hbm, o_hbm, sem)
    cp.start()
    cp.wait()


def flatten(x):
    """True Flatten equivalent: zero-cost metadata reshape (== torch .view)."""
    return x.reshape(x.shape[0], -1)


def flatten_pallas_dma(x):
    """Flatten materialized via a single HBM->HBM async copy (no VMEM staging)."""
    B = x.shape[0]
    F = math.prod(x.shape[1:])
    itemsize = jnp.dtype(x.dtype).itemsize
    x2d = x.reshape(B, F)  # metadata-only; element order matches torch .view
    return pl.pallas_call(
        _dma_copy_kernel,
        out_shape=jax.ShapeDtypeStruct((B, F), x.dtype),
        in_specs=[pl.BlockSpec(memory_space=pl.ANY)],
        out_specs=pl.BlockSpec(memory_space=pl.ANY),
        scratch_shapes=[pltpu.SemaphoreType.DMA],
        cost_estimate=pl.CostEstimate(
            flops=0, transcendentals=0, bytes_accessed=2 * B * F * itemsize),
    )(x2d)


def flatten_pallas(x, *, vmem_tile_budget_bytes=4 * 1024 * 1024):
    """Flatten that materializes a fresh contiguous (B, F) via a tiled Pallas copy.

    x: (B, ...) array.  Returns (B, prod(rest)) in row-major order, identical
    to PyTorch's contiguous `x.view(B, -1)`.
    """
    B = x.shape[0]
    F = math.prod(x.shape[1:])
    itemsize = jnp.dtype(x.dtype).itemsize
    sub = _min_sublane(x.dtype)

    x2d = x.reshape(B, F)  # metadata-only reshape

    bytes_per_row = F * itemsize
    full_row_fits = sub * bytes_per_row <= vmem_tile_budget_bytes

    if full_row_fits or F % _LANE != 0:
        # ---- tf = F: each (tb, F) block is one linear, unstrided HBM region.
        # (Also the non-128-aligned path: lane dim stays unblocked, full-dim
        # exemption; only the ragged lane tail of the array itself matters.)
        tf = F
        if B <= sub:
            tb = B  # full-dim exemption (e.g. B = 2 in the test)
        else:
            max_rows = max(sub, vmem_tile_budget_bytes // bytes_per_row)
            tb = min(B, (max_rows // sub) * sub)
            # v7x megacore: keep >= 2 grid steps on the parallel axis when the
            # batch can still be split into native sublane multiples.
            if B >= 2 * sub and pl.cdiv(B, tb) < 2:
                tb = ((pl.cdiv(B, 2) + sub - 1) // sub) * sub
        grid = (pl.cdiv(B, tb),)
        in_specs = [pl.BlockSpec((tb, tf), lambda i: (i, 0))]
        out_specs = pl.BlockSpec((tb, tf), lambda i: (i, 0))
        dim_sem = ("parallel",)
    else:
        # ---- A single sublane-group of full rows exceeds the budget: tile the
        # lane dim too (strided row segments are unavoidable here).
        tb = B if B <= sub else sub
        tf = max(_LANE,
                 (vmem_tile_budget_bytes // (tb * itemsize) // _LANE) * _LANE)
        tf = min(tf, F)
        grid = (pl.cdiv(B, tb), pl.cdiv(F, tf))
        in_specs = [pl.BlockSpec((tb, tf), lambda i, j: (i, j))]
        out_specs = pl.BlockSpec((tb, tf), lambda i, j: (i, j))
        dim_sem = ("parallel", "parallel")

    return pl.pallas_call(
        _copy_kernel,
        out_shape=jax.ShapeDtypeStruct((B, F), x.dtype),
        grid_spec=pltpu.PrefetchScalarGridSpec(
            num_scalar_prefetch=0,
            grid=grid,
            in_specs=in_specs,
            out_specs=out_specs,
        ),
        compiler_params=pltpu.CompilerParams(
            # Independent tiles: parallel axes -> megacore sharding on v7x.
            dimension_semantics=dim_sem,
            # 4x (double-buffered in + out) of a 4 MiB tile = 16 MiB, well under
            # this explicit limit on v5e/v6e/v7x alike.
            vmem_limit_bytes=32 * 1024 * 1024,
        ),
        cost_estimate=pl.CostEstimate(
            flops=0, transcendentals=0, bytes_accessed=2 * B * F * itemsize),
    )(x2d)


if __name__ == "__main__":
    key = jax.random.PRNGKey(0)
    # Small NCHW input consistent with a conv-net flatten: (2, 4, 16, 16)
    x = jax.random.normal(key, (2, 4, 16, 16), dtype=jnp.float32)

    y_ref = flatten(x)

    # Primary path: full-row, lane-dense, double-buffered VMEM copy.
    y = flatten_pallas(x)
    jax.block_until_ready(y)
    assert y.shape == (2, 4 * 16 * 16)
    assert y.dtype == x.dtype
    assert bool(jnp.all(y == y_ref))

    # HBM -> HBM DMA path (no VMEM staging, no per-tile overhead).
    y_dma = flatten_pallas_dma(x)
    jax.block_until_ready(y_dma)
    assert y_dma.shape == y_ref.shape
    assert bool(jnp.all(y_dma == y_ref))

    # Non-128-aligned flatten width: lane dim left unblocked, tiled over B.
    x_odd = jax.random.normal(key, (2, 3, 5, 7), dtype=jnp.float32)
    y_odd = flatten_pallas(x_odd)
    jax.block_until_ready(y_odd)
    assert bool(jnp.all(y_odd == flatten(x_odd)))

    # Packed dtype: sublane multiple is dtype-aware (16 for bf16).
    x_bf16 = x.astype(jnp.bfloat16)
    y_bf16 = flatten_pallas(x_bf16)
    jax.block_until_ready(y_bf16)
    assert bool(jnp.all(y_bf16 == flatten(x_bf16)))

    print("KERNEL_OK")
</pallas_src>

<mosaic_0001>
module attributes {stable_mosaic.version = 11 : i64} {
  func.func @_copy_kernel(%arg0: i32, %arg1: memref<2x1024xf32, #tpu.memory_space<vmem>>, %arg2: memref<2x1024xf32, #tpu.memory_space<vmem>>) attributes {dimension_semantics = [#tpu.dimension_semantics<parallel>], iteration_bounds = array<i64: 1>, scalar_prefetch = 0 : i64, scratch_operands = 0 : i64, tpu.core_type = #tpu.core_type<tc>, window_params = [{transform_indices = @transform_0, window_bounds = array<i64: 2, 1024>}, {transform_indices = @transform_1, window_bounds = array<i64: 2, 1024>}]} {
    %c0 = arith.constant 0 : index
    %c0_0 = arith.constant 0 : index
    %0 = vector.load %arg1[%c0, %c0_0] : memref<2x1024xf32, #tpu.memory_space<vmem>>, vector<2x1024xf32>
    %c0_1 = arith.constant 0 : index
    %c0_2 = arith.constant 0 : index
    %1 = vector.load %arg2[%c0_1, %c0_2] : memref<2x1024xf32, #tpu.memory_space<vmem>>, vector<2x1024xf32>
    tpu.vector_store %arg2[%c0_1, %c0_2], %0 {strides = array<i32>} : memref<2x1024xf32, #tpu.memory_space<vmem>>, vector<2x1024xf32>,
    return
  }
  func.func @transform_0(%arg0: i32) -> (i32, i32) {
    %c0_i32 = arith.constant 0 : i32
    %c0_i32_0 = arith.constant 0 : i32
    return %arg0, %c0_i32 : i32, i32
  }
  func.func @transform_1(%arg0: i32) -> (i32, i32) {
    %c0_i32 = arith.constant 0 : i32
    %c0_i32_0 = arith.constant 0 : i32
    return %arg0, %c0_i32 : i32, i32
  }
}

</mosaic_0001>

<bundles_post_ra>
// kernel: tpu_custom_call.1
= control target key start
LH: loop header
LB: loop body
LE: loop exit
PB: predicated region body
PF: predicated region fallthrough
CT: control target
= control target key end

     0   :  { %6 = vsyncpa [#allocation3], 0  ;;  %s126_s0 = inlined_call_operand.hbm [shape: f32[2,1024], index: 0, kind: input, shape index: {}]   ;;  %s127_s1 = inlined_call_operand.hbm [shape: f32[2,1024], index: 1, kind: output, shape index: {}]  }
   0x1   :  { %7 = vsyncpa [#allocation4], 0  ;;  %s90_s6 = smov [#allocation2]   ;;  %s42_s10 = scalar_lea.hbm %s126_s0, 256 }
   0x2   :  { %s14_s7 = sshll.u32 %s90_s6, 4  ;;  %p43_p0 = scmp.ne.s32.totalorder %s126_s0, %s42_s10  ;;  %s15_s7 = int_to_ptr.vmem [resolvable:$true] %s14_s7 }
   0x3   :  { %p46_p1 = scmp.lt.u32.totalorder %s42_s10, %s126_s0 }
   0x5   :  { %p48_p2 = pnand %p46_p1, %p43_p0 }
   0x7   :  { %51 = shalt.err (!%p48_p2)
}
   0x8   :  { %s52_s15 = scalar_lea.vmem %s15_s7, 256  ;;  %p57_p4 = scmp.lt.s32.totalorder %s15_s7, %s15_s7 }
   0x9   :  { %p53_p3 = scmp.ne.s32.totalorder %s15_s7, %s52_s15  ;;  %p58_p5 = scmp.lt.s32.totalorder %s52_s15, %s52_s15 }
   0xb   :  { %p59_p6 = por %p58_p5, %p57_p4 }
   0xd   :  { %p60_p7 = pnand %p59_p6, %p53_p3 }
   0xf   :  { %63 = shalt.err (!%p60_p7)
}
  0x10   :  { %17 = dma.hbm_to_vmem [thread:$0]  %s126_s0, 256, %s15_s7, [#allocation3]  }
  0x11   :  { %86 = dma.done.wait [#allocation3], 256  }
  0x12   :  { %87 = vsyncadd [#allocation3], 4294967040  ;;  %s91_s18 = smov [#allocation5]   ;;  %v21_v0 = vld [vmem:[#allocation2] sm:$0xff]  ;;  %v22_v1 = vld [vmem:[#allocation2 + $0x8] sm:$0xff] }
  0x13   :  { %s31_s19 = sshll.u32 %s91_s18, 4  ;;  %23 = vst [vmem:[#allocation5] sm:$0xff] %v21_v0  ;;  %24 = vst [vmem:[#allocation5 + $0x8] sm:$0xff] %v22_v1  ;;  %s32_s19 = int_to_ptr.vmem [resolvable:$true] %s31_s19 }
  0x14   :  { %s64_s20 = scalar_lea.vmem %s32_s19, 256  ;;  %p69_p9 = scmp.lt.s32.totalorder %s32_s19, %s32_s19 }
  0x15   :  { %p65_p8 = scmp.ne.s32.totalorder %s32_s19, %s64_s20  ;;  %p70_p10 = scmp.lt.s32.totalorder %s64_s20, %s64_s20 }
  0x17   :  { %p71_p11 = por %p70_p10, %p69_p9 }
  0x19   :  { %p72_p12 = pnand %p71_p11, %p65_p8 }
  0x1b   :  { %75 = shalt.err (!%p72_p12)
}
  0x1c   :  { %s76_s0 = scalar_lea.hbm %s127_s1, 256 }
  0x1d   :  { %p77_p13 = scmp.ne.s32.totalorder %s127_s1, %s76_s0  ;;  %p80_p0 = scmp.lt.u32.totalorder %s76_s0, %s127_s1 }
  0x1f   :  { %p82_p1 = pnand %p80_p0, %p77_p13 }
  0x21   :  { %85 = shalt.err (!%p82_p1)
}
  0x22   :  { %34 = dma.vmem_to_hbm [thread:$0]  %s32_s19, 256, %s127_s1, [#allocation4]  }
  0x23   :  { %88 = dma.done.wait [#allocation4], 256  }
  0x24   :  { %89 = vsyncadd [#allocation4], 4294967040 }
  0x25   :  { %38 = vsyncpa [#allocation3], 1 }
  0x26   :  { %39 = vsyncpa [#allocation4], 1 }

</bundles_post_ra>
